<compile_context>
chip_gen: v5e
topology: v5e:2x2
jax: 0.10.0
libtpu: 0.0.40
codegen_flags: <defaults>
</compile_context>

<pallas_src>
import jax
import jax.numpy as jnp
from jax.experimental import pallas as pl
from jax.experimental.pallas import tpu as pltpu

LANE = 128


def _round_up(x, m):
    return (x + m - 1) // m * m


def decoder_kernel(dec_ref, ctx_ref, w_ref, idx_ref, score_ref):
    B, H = dec_ref.shape
    BL = ctx_ref.shape[0]
    L = BL // B
    H2 = 2 * H
    R_W = _round_up(H + 2, 8)          # sublane-aligned start of [w_out.T ; b_out]

    dec = dec_ref[...]                 # (B, H)
    ctx = ctx_ref[...]                 # (B*L, H)

    b_sum = w_ref[H:H + 1, 0:H2]       # (1, 2H)  (b_in_s+b_ctx_s | b_in_e+b_ctx_e)
    v_se = w_ref[H + 1:H + 2, 0:H2]    # (1, 2H)  (v_s | v_e)

    # Single MXU push for BOTH heads and BOTH operands:
    #   [ctx ; dec] @ [w_in_se | w_ctx_se]  -> (B*L+B, 4H), lane dim 4H = 128.
    acts = jnp.concatenate([ctx, dec], axis=0)                       # (B*L+B, H)
    proj = jnp.dot(acts, w_ref[0:H, 0:4 * H],
                   preferred_element_type=jnp.float32)               # (B*L+B, 4H)
    c = proj[:BL, H2:] + b_sum         # ctx @ [w_ctx_s|w_ctx_e] + (b_in+b_ctx)
    lin = proj[BL:, :H2]               # dec @ [w_in_s |w_in_e ]

    # Single tanh over both heads, per-head V-weighted lane reduce.
    t = jnp.tanh(lin[:, None, :] + c.reshape(B, L, H2))              # (B, L, 2H)
    u = t * v_se[None, :, :]
    att_s = jnp.sum(u[:, :, :H], axis=2)                             # (B, L)
    att_e = jnp.sum(u[:, :, H:], axis=2)                             # (B, L)

    # Lane-dense, unmasked store of both attention rows, zero-padded to LANE.
    pad_w = idx_ref.shape[1] - 2 * L
    pieces = [att_s, att_e]
    if pad_w:
        pieces.append(jnp.zeros((B, pad_w), jnp.float32))
    idx_ref[...] = jnp.concatenate(pieces, axis=1)

    # First-occurrence argmax per head (matches torch .max(dim=1) indices).
    # TODO(synk): an all-NaN attention row yields index L (OOB) here; torch
    # behaviour under NaN inputs is not reproduced.
    col = jax.lax.broadcasted_iota(jnp.int32, (B, L), 1)

    def first_argmax(att):
        m = jnp.max(att, axis=1, keepdims=True)
        return jnp.min(jnp.where(att >= m, col, L), axis=1, keepdims=True)  # (B, 1)

    fs = first_argmax(att_s)
    fe = first_argmax(att_e)

    # Fused one-hot gather for both heads: (2B, B*L) selector @ (B*L, H).
    row = jax.lax.broadcasted_iota(jnp.int32, (2 * B, 1), 0)
    batch = jnp.where(row < B, row, row - B)                          # (2B, 1)
    hot = batch * L + jnp.concatenate([fs, fe], axis=0)               # (2B, 1)
    colf = jax.lax.broadcasted_iota(jnp.int32, (2 * B, BL), 1)
    sel = (colf == hot).astype(jnp.float32)                           # (2B, B*L)
    gath = jnp.dot(sel, ctx, preferred_element_type=jnp.float32)      # (2B, H)

    # score = [ctx@start, ctx@end, dec, 1] @ [w_out.T ; b_out]  (bias folded).
    ones = jnp.ones((B, 1), jnp.float32)
    feat = jnp.concatenate([gath[:B, :], gath[B:, :], dec, ones], axis=1)  # (B, 3H+1)
    wout = w_ref[R_W:R_W + 3 * H + 1, :]                              # (3H+1, LANE)
    score_ref[...] = jnp.dot(feat, wout, preferred_element_type=jnp.float32)


def pack_params(params, H, out_dim):
    """One-time weight packing into a single 128-lane VMEM slab.

    Rows:
      [0 : H)              [ w_in_s.T | w_in_e.T | w_ctx_s.T | w_ctx_e.T ]   (H, 4H)
      H                    b_in_s+b_ctx_s | b_in_e+b_ctx_e                   (2H lanes)
      H+1                  v_s | v_e                                         (2H lanes)
      [H+2 : R_W)          zero padding (sublane alignment)
      [R_W : R_W+3H+1)     [ w_out.T ; b_out ]  zero-padded to LANE lanes
    """
    assert 4 * H <= LANE and out_dim <= LANE and 3 * H + 1 <= LANE
    R_W = _round_up(H + 2, 8)
    rows = R_W + 3 * H + 1

    w_in_se = jnp.concatenate([params["w_in_s"].T, params["w_in_e"].T], axis=1)    # (H, 2H)
    w_ctx_se = jnp.concatenate([params["w_ctx_s"].T, params["w_ctx_e"].T], axis=1)  # (H, 2H)
    w_proj = jnp.concatenate([w_in_se, w_ctx_se], axis=1)                           # (H, 4H)
    b_sum = jnp.concatenate([params["b_in_s"] + params["b_ctx_s"],
                             params["b_in_e"] + params["b_ctx_e"]], axis=1)         # (1, 2H)
    v_se = jnp.concatenate([params["v_s"], params["v_e"]], axis=1)                  # (1, 2H)
    wout_aug = jnp.concatenate([params["w_out"].T, params["b_out"]], axis=0)        # (3H+1, out)

    slab = jnp.zeros((rows, LANE), jnp.float32)
    slab = slab.at[0:H, 0:4 * H].set(w_proj)
    slab = slab.at[H, 0:2 * H].set(b_sum[0])
    slab = slab.at[H + 1, 0:2 * H].set(v_se[0])
    slab = slab.at[R_W:R_W + 3 * H + 1, 0:out_dim].set(wout_aug)
    return slab


def make_decoder_fwd(B, L, H, out_dim):
    assert 2 * L <= LANE and out_dim <= LANE
    idx_pad = LANE     # lane-padded -> unmasked full-lane stores
    out_pad = LANE

    vmem = pl.BlockSpec(memory_space=pltpu.MemorySpace.VMEM)

    # No grid: whole-array VMEM residency (avoids 1-long pipeline machinery).
    # NOTE(v7x): if B/L/H grow, add a grid over B with
    # dimension_semantics=("parallel",) and tile B*L against the 64 MiB VMEM.
    call = pl.pallas_call(
        decoder_kernel,
        in_specs=[vmem, vmem, vmem],
        out_specs=(vmem, vmem),
        out_shape=(jax.ShapeDtypeStruct((B, idx_pad), jnp.float32),
                   jax.ShapeDtypeStruct((B, out_pad), jnp.float32)),
    )

    @jax.jit
    def fwd(decoder_input, context, w_slab):
        # Zero per-call packing: reshape is metadata-only; weights come
        # pre-packed from pack_params (done once).
        ctx_flat = context.reshape(B * L, H)
        idx_p, score_p = call(decoder_input, ctx_flat, w_slab)
        index_vector = idx_p[:, :2 * L].reshape(B, 2, L)
        output_score = score_p[:, :out_dim]
        return index_vector, output_score

    return fwd


def reference_fwd(decoder_input, context, params):
    """Pure-JAX reference mirroring the PyTorch forward."""
    def attention(w_in, b_in, w_ctx, b_ctx, v):
        lin = decoder_input @ w_in.T + b_in[0]
        c = jnp.einsum("blh,gh->blg", context, w_ctx) + b_ctx[0]
        return jnp.sum(jnp.tanh(lin[:, None, :] + c) * v[0][None, None, :], axis=-1)

    att_s = attention(params["w_in_s"], params["b_in_s"],
                      params["w_ctx_s"], params["b_ctx_s"], params["v_s"])
    att_e = attention(params["w_in_e"], params["b_in_e"],
                      params["w_ctx_e"], params["b_ctx_e"], params["v_e"])
    idx_s = jnp.argmax(att_s, axis=1)
    idx_e = jnp.argmax(att_e, axis=1)
    gath_s = jnp.take_along_axis(context, idx_s[:, None, None], axis=1)[:, 0, :]
    gath_e = jnp.take_along_axis(context, idx_e[:, None, None], axis=1)[:, 0, :]
    feat = jnp.concatenate([gath_s, gath_e, decoder_input], axis=1)
    score = feat @ params["w_out"].T + params["b_out"][0]
    index_vector = jnp.stack([att_s, att_e], axis=1)
    return index_vector, score


def init_params(key, H, out_dim):
    ks = jax.random.split(key, 12)
    s = 1.0 / jnp.sqrt(H)
    so = 1.0 / jnp.sqrt(3 * H)
    u = lambda k, shape, lo, hi: jax.random.uniform(k, shape, jnp.float32, lo, hi)
    return {
        "w_in_s":  u(ks[0], (H, H), -s, s),
        "b_in_s":  u(ks[1], (1, H), -s, s),
        "w_ctx_s": u(ks[2], (H, H), -s, s),
        "b_ctx_s": u(ks[3], (1, H), -s, s),
        "v_s":     u(ks[4], (1, H), -1.0, 1.0),
        "w_in_e":  u(ks[5], (H, H), -s, s),
        "b_in_e":  u(ks[6], (1, H), -s, s),
        "w_ctx_e": u(ks[7], (H, H), -s, s),
        "b_ctx_e": u(ks[8], (1, H), -s, s),
        "v_e":     u(ks[9], (1, H), -1.0, 1.0),
        "w_out":   u(ks[10], (out_dim, 3 * H), -so, so),
        "b_out":   u(ks[11], (1, out_dim), -so, so),
    }


if __name__ == "__main__":
    B, L, H, OUT = 2, 8, 32, 4

    key = jax.random.PRNGKey(0)
    k_dec, k_ctx, k_par = jax.random.split(key, 3)
    decoder_input = jax.random.normal(k_dec, (B, H), jnp.float32)
    context = jax.random.normal(k_ctx, (B, L, H), jnp.float32)
    params = init_params(k_par, H, OUT)

    # One-time weight packing (hoisted out of the per-call path).
    w_slab = jax.block_until_ready(pack_params(params, H, OUT))

    fwd = make_decoder_fwd(B, L, H, OUT)
    index_vector, output_score = fwd(decoder_input, context, w_slab)
    jax.block_until_ready((index_vector, output_score))

    # correctness check vs pure-JAX reference
    ref_idx, ref_score = reference_fwd(decoder_input, context, params)
    assert index_vector.shape == (B, 2, L) and output_score.shape == (B, OUT)
    assert jnp.allclose(index_vector, ref_idx, atol=1e-4, rtol=1e-4)
    assert jnp.allclose(output_score, ref_score, atol=1e-4, rtol=1e-4)

    print("KERNEL_OK")
</pallas_src>

<mosaic_0001>
module attributes {stable_mosaic.version = 11 : i64} {
  func.func @decoder_kernel(%arg0: memref<2x32xf32, #tpu.memory_space<vmem>>, %arg1: memref<16x32xf32, #tpu.memory_space<vmem>>, %arg2: memref<137x128xf32, #tpu.memory_space<vmem>>, %arg3: memref<2x128xf32, #tpu.memory_space<vmem>>, %arg4: memref<2x128xf32, #tpu.memory_space<vmem>>) attributes {dimension_semantics = [], scalar_prefetch = 0 : i64, scratch_operands = 0 : i64, tpu.core_type = #tpu.core_type<tc>} {
    %c0 = arith.constant 0 : index
    %c0_0 = arith.constant 0 : index
    %0 = vector.load %arg0[%c0, %c0_0] : memref<2x32xf32, #tpu.memory_space<vmem>>, vector<2x32xf32>
    %c0_1 = arith.constant 0 : index
    %c0_2 = arith.constant 0 : index
    %1 = vector.load %arg1[%c0_1, %c0_2] : memref<16x32xf32, #tpu.memory_space<vmem>>, vector<16x32xf32>
    %c32 = arith.constant 32 : index
    %c0_3 = arith.constant 0 : index
    %2 = vector.load %arg2[%c32, %c0_3] : memref<137x128xf32, #tpu.memory_space<vmem>>, vector<1x64xf32>
    %c33 = arith.constant 33 : index
    %c0_4 = arith.constant 0 : index
    %3 = vector.load %arg2[%c33, %c0_4] : memref<137x128xf32, #tpu.memory_space<vmem>>, vector<1x64xf32>
    %4 = tpu.concatenate %1, %0 in 0 : vector<16x32xf32>, vector<2x32xf32> -> vector<18x32xf32>
    %c0_5 = arith.constant 0 : index
    %c0_6 = arith.constant 0 : index
    %5 = vector.load %arg2[%c0_5, %c0_6] : memref<137x128xf32, #tpu.memory_space<vmem>>, vector<32x128xf32>
    %cst = arith.constant dense<0.000000e+00> : vector<18x128xf32>
    %6 = tpu.matmul %4, %5, %cst {dimension_numbers = #tpu.dot_dimension_numbers<[1], [0], [0], [1], [0, 0, 1, 1], [], []>} : vector<18x32xf32>, vector<32x128xf32>, vector<18x128xf32> -> vector<18x128xf32>
    %7 = vector.extract_strided_slice %6 {offsets = [0, 64], sizes = [16, 64], strides = [1, 1]} : vector<18x128xf32> to vector<16x64xf32>
    %8 = vector.broadcast %2 : vector<1x64xf32> to vector<16x64xf32>
    %9 = arith.addf %7, %8 : vector<16x64xf32>
    %10 = vector.extract_strided_slice %6 {offsets = [16, 0], sizes = [2, 64], strides = [1, 1]} : vector<18x128xf32> to vector<2x64xf32>
    %11 = vector.shape_cast %10 : vector<2x64xf32> to vector<2x1x64xf32>
    %12 = vector.shape_cast %9 : vector<16x64xf32> to vector<2x8x64xf32>
    %13 = vector.broadcast %11 : vector<2x1x64xf32> to vector<2x8x64xf32>
    %14 = arith.addf %13, %12 : vector<2x8x64xf32>
    %15 = math.tanh %14 : vector<2x8x64xf32>
    %16 = vector.shape_cast %3 : vector<1x64xf32> to vector<1x1x64xf32>
    %17 = vector.broadcast %16 : vector<1x1x64xf32> to vector<2x8x64xf32>
    %18 = arith.mulf %15, %17 : vector<2x8x64xf32>
    %19 = vector.extract_strided_slice %18 {offsets = [0, 0, 0], sizes = [2, 8, 32], strides = [1, 1, 1]} : vector<2x8x64xf32> to vector<2x8x32xf32>
    %cst_7 = arith.constant dense<0.000000e+00> : vector<2x8xf32>
    %20 = vector.multi_reduction <add>, %19, %cst_7 [2] : vector<2x8x32xf32> to vector<2x8xf32>
    %21 = vector.extract_strided_slice %18 {offsets = [0, 0, 32], sizes = [2, 8, 32], strides = [1, 1, 1]} : vector<2x8x64xf32> to vector<2x8x32xf32>
    %cst_8 = arith.constant dense<0.000000e+00> : vector<2x8xf32>
    %22 = vector.multi_reduction <add>, %21, %cst_8 [2] : vector<2x8x32xf32> to vector<2x8xf32>
    %cst_9 = arith.constant 0.000000e+00 : f32
    %23 = vector.broadcast %cst_9 : f32 to vector<2x112xf32>
    %24 = tpu.concatenate %20, %22, %23 in 1 : vector<2x8xf32>, vector<2x8xf32>, vector<2x112xf32> -> vector<2x128xf32>
    %c0_10 = arith.constant 0 : index
    %c0_11 = arith.constant 0 : index
    %25 = vector.load %arg3[%c0_10, %c0_11] : memref<2x128xf32, #tpu.memory_space<vmem>>, vector<2x128xf32>
    tpu.vector_store %arg3[%c0_10, %c0_11], %24 {strides = array<i32>} : memref<2x128xf32, #tpu.memory_space<vmem>>, vector<2x128xf32>,
    %26 = tpu.iota {dimensions = array<i32: 1>} : vector<2x8xi32>
    %cst_12 = arith.constant dense<0xFF800000> : vector<2xf32>
    %27 = vector.multi_reduction <maximumf>, %20, %cst_12 [1] : vector<2x8xf32> to vector<2xf32>
    %28 = vector.shape_cast %27 : vector<2xf32> to vector<2x1xf32>
    %29 = vector.broadcast %28 : vector<2x1xf32> to vector<2x8xf32>
    %30 = arith.cmpf oge, %20, %29 : vector<2x8xf32>
    %c8_i32 = arith.constant 8 : i32
    %31 = vector.broadcast %c8_i32 : i32 to vector<2x8xi32>
    %32 = arith.select %30, %26, %31 : vector<2x8xi1>, vector<2x8xi32>
    %cst_13 = arith.constant dense<2147483647> : vector<2xi32>
    %33 = vector.multi_reduction <minsi>, %32, %cst_13 [1] : vector<2x8xi32> to vector<2xi32>
    %34 = vector.shape_cast %33 : vector<2xi32> to vector<2x1xi32>
    %cst_14 = arith.constant dense<0xFF800000> : vector<2xf32>
    %35 = vector.multi_reduction <maximumf>, %22, %cst_14 [1] : vector<2x8xf32> to vector<2xf32>
    %36 = vector.shape_cast %35 : vector<2xf32> to vector<2x1xf32>
    %37 = vector.broadcast %36 : vector<2x1xf32> to vector<2x8xf32>
    %38 = arith.cmpf oge, %22, %37 : vector<2x8xf32>
    %c8_i32_15 = arith.constant 8 : i32
    %39 = vector.broadcast %c8_i32_15 : i32 to vector<2x8xi32>
    %40 = arith.select %38, %26, %39 : vector<2x8xi1>, vector<2x8xi32>
    %cst_16 = arith.constant dense<2147483647> : vector<2xi32>
    %41 = vector.multi_reduction <minsi>, %40, %cst_16 [1] : vector<2x8xi32> to vector<2xi32>
    %42 = vector.shape_cast %41 : vector<2xi32> to vector<2x1xi32>
    %43 = tpu.iota {dimensions = array<i32: 0>} : vector<4x1xi32>
    %c2_i32 = arith.constant 2 : i32
    %44 = vector.broadcast %c2_i32 : i32 to vector<4x1xi32>
    %45 = arith.cmpi slt, %43, %44 : vector<4x1xi32>
    %c2_i32_17 = arith.constant 2 : i32
    %46 = vector.broadcast %c2_i32_17 : i32 to vector<4x1xi32>
    %47 = arith.subi %43, %46 : vector<4x1xi32>
    %48 = arith.select %45, %43, %47 : vector<4x1xi1>, vector<4x1xi32>
    %c8_i32_18 = arith.constant 8 : i32
    %49 = vector.broadcast %c8_i32_18 : i32 to vector<4x1xi32>
    %50 = arith.muli %48, %49 : vector<4x1xi32>
    %51 = tpu.concatenate %34, %42 in 0 : vector<2x1xi32>, vector<2x1xi32> -> vector<4x1xi32>
    %52 = arith.addi %50, %51 : vector<4x1xi32>
    %53 = tpu.iota {dimensions = array<i32: 1>} : vector<4x16xi32>
    %54 = vector.broadcast %52 : vector<4x1xi32> to vector<4x16xi32>
    %55 = arith.cmpi eq, %53, %54 : vector<4x16xi32>
    %56 = arith.extui %55 : vector<4x16xi1> to vector<4x16xi32>
    %57 = arith.sitofp %56 : vector<4x16xi32> to vector<4x16xf32>
    %cst_19 = arith.constant dense<0.000000e+00> : vector<4x32xf32>
    %58 = tpu.matmul %57, %1, %cst_19 {dimension_numbers = #tpu.dot_dimension_numbers<[1], [0], [0], [1], [0, 0, 1, 1], [], []>} : vector<4x16xf32>, vector<16x32xf32>, vector<4x32xf32> -> vector<4x32xf32>
    %cst_20 = arith.constant 1.000000e+00 : f32
    %59 = vector.broadcast %cst_20 : f32 to vector<2x1xf32>
    %60 = vector.extract_strided_slice %58 {offsets = [0, 0], sizes = [2, 32], strides = [1, 1]} : vector<4x32xf32> to vector<2x32xf32>
    %61 = vector.extract_strided_slice %58 {offsets = [2, 0], sizes = [2, 32], strides = [1, 1]} : vector<4x32xf32> to vector<2x32xf32>
    %62 = tpu.concatenate %60, %61, %0, %59 in 1 : vector<2x32xf32>, vector<2x32xf32>, vector<2x32xf32>, vector<2x1xf32> -> vector<2x97xf32>
    %c40 = arith.constant 40 : index
    %c0_21 = arith.constant 0 : index
    %63 = vector.load %arg2[%c40, %c0_21] : memref<137x128xf32, #tpu.memory_space<vmem>>, vector<97x128xf32>
    %cst_22 = arith.constant dense<0.000000e+00> : vector<2x128xf32>
    %64 = tpu.matmul %62, %63, %cst_22 {dimension_numbers = #tpu.dot_dimension_numbers<[1], [0], [0], [1], [0, 0, 1, 1], [], []>} : vector<2x97xf32>, vector<97x128xf32>, vector<2x128xf32> -> vector<2x128xf32>
    %c0_23 = arith.constant 0 : index
    %c0_24 = arith.constant 0 : index
    %65 = vector.load %arg4[%c0_23, %c0_24] : memref<2x128xf32, #tpu.memory_space<vmem>>, vector<2x128xf32>
    tpu.vector_store %arg4[%c0_23, %c0_24], %64 {strides = array<i32>} : memref<2x128xf32, #tpu.memory_space<vmem>>, vector<2x128xf32>,
    return
  }
}

</mosaic_0001>

<bundles_post_ra>
// kernel: fwd.1
= control target key start
LH: loop header
LB: loop body
LE: loop exit
PB: predicated region body
PF: predicated region fallthrough
CT: control target
= control target key end

     0   :  { %10 = vsyncpa [#allocation3], 0  ;;  %s603_s0 = inlined_call_operand.hbm [shape: f32[2,32], index: 0, kind: input, shape index: {}]   ;;  %s604_s1 = inlined_call_operand.hbm [shape: f32[16,32], index: 1, kind: input, shape index: {}]   ;;  %s605_s2 = inlined_call_operand.hbm [shape: f32[137,128], index: 2, kind: input, shape index: {}]   ;;  %s606_s3 = inlined_call_operand.vmem [shape: f32[2,128], index: 3, kind: output, shape index: {0}]   ;;  %s607_s4 = inlined_call_operand.hbm [shape: f32[2,128], index: 4, kind: output, shape index: {1}]  }
   0x1   :  { %11 = vsyncpa [#allocation6], 0  ;;  %s28_s17 = sshll.u32 %s604_s1, 4  ;;  %s29_s17 = int_to_ptr.hbm [resolvable:$true] %s28_s17 }
   0x2   :  { %12 = vsyncpa [#allocation4], 0  ;;  %s506_s18 = smov [#allocation5]   ;;  %s18_s22 = sshll.u32 %s603_s0, 4  ;;  %s19_s22 = int_to_ptr.hbm [resolvable:$true] %s18_s22 }
   0x3   :  { %s30_s19 = sshll.u32 %s506_s18, 4  ;;  %s507_s23 = smov 128   ;;  %s31_s19 = int_to_ptr.vmem [resolvable:$true] %s30_s19 }
   0x4   :  { %s508_s24 = smov 8   ;;  %s509_s25 = smov [#allocation2]  }
   0x5   :  { %36 = dma.hbm_to_vmem [thread:$0]  %s29_s17, 256, %s31_s19, [#allocation6], %s507_s23, %s507_s23, %s508_s24  }
   0x6   :  { %s20_s26 = sshll.u32 %s509_s25, 4  ;;  %s41_s29 = sshll.u32 %s605_s2, 4  ;;  %s21_s26 = int_to_ptr.vmem [resolvable:$true] %s20_s26  ;;  %s42_s29 = int_to_ptr.hbm [resolvable:$true] %s41_s29 }
   0x7   :  { %23 = dma.hbm_to_vmem [thread:$0]  %s19_s22, 32, %s21_s26, [#allocation3]  }
   0x8   :  { %s510_s1 = smov [#allocation7]  }
   0x9   :  { %s43_s30 = sshll.u32 %s510_s1, 4  ;;  %s44_s30 = int_to_ptr.vmem [resolvable:$true] %s43_s30 }
   0xa   :  { %49 = dma.hbm_to_vmem [thread:$0]  %s42_s29, 2304, %s44_s30, [#allocation6], %s507_s23, %s507_s23, %s508_s24  }
   0xb   :  { %500 = dma.done.wait [#allocation3], 32  }
   0xc   :  { %501 = vsyncadd [#allocation3], 4294967264 }
   0xd   :  { %502 = dma.done.wait [#allocation6], 2560  }
   0xe   :  { %503 = vsyncadd [#allocation6], 4294964736  ;;  %v70_v0 = vld [vmem:[#allocation7 + $0x18] sm:$0xff]  ;;  %v69_v1 = vld [vmem:[#allocation7 + $0x10] sm:$0xff]  ;;  %s511_s0 = smov 64   ;;  %vm71_vm0 = vcmask 261120   ;;  %v157_v32 = vlaneseq }
   0xf   :  { %93 = vmatpush.msra.mxu0 %v70_v0  ;;  %v64_v2 = vld [vmem:[#allocation5 + $0x8] sm:$0xff]  ;;  %v68_v3 = vld [vmem:[#allocation7 + $0x8] sm:$0xff]  ;;  %v398_v4 = vld [vmem:[#allocation7 + $0x20] ss:$0 sm:$0xff]  ;;  %s512_s2 = smov 96   ;;  %vm161_vm1 = vcmask 1041409  }
  0x10   :  { %292 = vmatpush.msra.mxu1 %v64_v2  ;;  %v63_v5 = vld [vmem:[#allocation5] sm:$0xff]  ;;  %v67_v6 = vld [vmem:[#allocation7] sm:$0xff]  ;;  %109 = vrot.lane.b32.xlu0 %v398_v4, %s511_s0  ;;  %v554_v7 = vld [vmem:[#allocation2] sm:$0x3]  ;;  %v564_v33 = vshrl.u32 %v157_v32, 7  ;;  %v567_v34 = vand.u32 127, %v157_v32 }
  0x11   :  { %94 = vmatpush.msra.mxu0 %v69_v1  ;;  %v399_v18 = vld [vmem:[#allocation7 + $0x21] ss:$0 sm:$0xff]  ;;  %vm176_vm2 = vcmask 58368   ;;  %vm171_vm3 = vcmask 64512   ;;  %vm173_vm4 = vcmask 130048   ;;  %v513_v53 = vmov 0  }
  0x12   :  { %293 = vmatpush.msra.mxu1 %v63_v5  ;;  %394 = vset.pattern.permute.xlu1 %v564_v33  ;;  %v166_v41 = vadd.s32 4294967288, %v567_v34  ;;  %vm261_vm11 = vcmp.lt.s32.totalorder %v564_v33, 2  ;;  %vm266_vm12 = vcmask 1041408   ;;  %vm328_vm14 = vcmask 1040384   ;;  %s516_s7 = smov [#allocation8]   ;;  %s362_s11 = sshll.u32 %s607_s4, 4  ;;  %s363_s11 = int_to_ptr.hbm [resolvable:$true] %s362_s11 }
  0x13   :  { %95 = vmatpush.msra.mxu0 %v68_v3  ;;  %396 = vset.pattern.permute.xlu0 %v513_v53  ;;  %vm307_vm15 = vcmask 523264   ;;  %s360_s8 = sshll.u32 %s516_s7, 4  ;;  %s361_s8 = int_to_ptr.vmem [resolvable:$true] %s360_s8 }
  0x14   :  { %395 = vset.pattern.permute.xlu2 %v513_v53 }
  0x15   :  { %96 = vmatpush.msra.mxu0 %v67_v6 }
  0x16   :  { %375 = vmatmul.msk.f32.vlgmr.msra.gmra.mxu0 %vm71_vm0, %v63_v5 }
  0x1e   :  { %376 = vmatmul.msk.f32.gmra.mxu0 %vm71_vm0, %v64_v2 }
  0x26   :  { %377 = vmatmul.msk.f32.gmra.mxu0 %vm71_vm0, %v554_v7 }
  0x82   :  { %v110_v8 = vpop.permute.xlu0 %109 }
  0x93   :  { %v98_v9 = vpop.f32.mrf.mxu0 }
  0x94   :  { %v112_v10 = vadd.f32 %v110_v8, %v98_v9 }
  0x96   :  { %122 = vrot.lane.b32.xlu0 %v112_v10, %s511_s0 }
  0x9b   :  { %v101_v11 = vpop.f32.mrf.mxu0 }
  0x9c   :  { %v113_v12 = vadd.f32 %v110_v8, %v101_v11 }
  0x9e   :  { %124 = vrot.lane.b32.xlu1 %v113_v12, %s511_s0 }
  0xa3   :  { %v104_v13 = vpop.f32.mrf.mxu0 }
  0xa4   :  { %v116_v14 = vperm.slane %v104_v13, 0  ;;  %v115_v17 = vrot.slane %v104_v13, 1 }
  0xa6   :  { %v117_v19 = vperm.slane %v115_v17, 0 }
 0x108   :  { %v123_v15 = vpop.permute.xlu0 %122 }
 0x109   :  { %v128_v16 = vadd.f32 %v123_v15, %v116_v14 }
 0x10b   :  { %400 = vtanh.f32 %v128_v16 }
 0x110   :  { %v125_v20 = vpop.permute.xlu1 %124 }
 0x111   :  { %v401_v21 = vpop.eup %400  ;;  %v129_v22 = vadd.f32 %v125_v20, %v117_v19 }
 0x112   :  { %v133_v23 = vmul.f32 %v401_v21, %v399_v18 }
 0x113   :  { %402 = vtanh.f32 %v129_v22 }
 0x114   :  { %143 = vrot.lane.b32.xlu1 %v133_v23, %s512_s2  ;;  %v135_v26 = vsel %vm71_vm0, %v133_v23, 0.0 }
 0x119   :  { %v403_v24 = vpop.eup %402 }
 0x11a   :  { %v134_v25 = vmul.f32 %v403_v24, %v399_v18 }
 0x11c   :  { %145 = vrot.lane.b32.xlu2 %v134_v25, %s512_s2  ;;  %v138_v31 = vsel %vm71_vm0, %v134_v25, 0.0 }
 0x13e   :  { %136 = vadd.xlane.f32.xlu1 %v135_v26 }
 0x157   :  { %191 = vperm.xlu1 %394, %v567_v34  }
 0x15f   :  { %397 = vset.pattern.permute.xlu1 %v513_v53  ;;  %v314_v53 = vld [vmem:[#allocation7 + $0x40] sm:$0xff] }
 0x176   :  { %v146_v27 = vpop.permute.xlu2 %145 }
 0x177   :  { %v152_v28 = vsel %vm71_vm0, %v146_v27, 0.0 }
 0x178   :  { %153 = vadd.xlane.f32.xlu0 %v152_v28 }
 0x186   :  { %v144_v29 = vpop.permute.xlu1 %143 }
 0x187   :  { %v149_v30 = vsel %vm71_vm0, %v144_v29, 0.0  ;;  %v378_v29 = vadd.s32 4294967294, %v564_v33 }
 0x188   :  { %150 = vadd.xlane.f32.xlu2 %v149_v30 }
 0x190   :  { %139 = vadd.xlane.f32.xlu2 %v138_v31 }
 0x1b1   :  { %v137_v42 = vpop.xlane.xlu1 %136 }
 0x1b2   :  { %v159_v45 = vperm.slane %v137_v42, %v567_v34 }
 0x1c9   :  { %v192_v57 = vpop.permute.xlu1 %191 }
 0x1eb   :  { %v154_v35 = vpop.xlane.xlu0 %153 }
 0x1ec   :  { %v220_v37 = vperm.slane %v154_v35, %v567_v34  ;;  %v168_v46 = vperm.slane %v154_v35, %v166_v41 }
 0x1fb   :  { %v151_v36 = vpop.xlane.xlu2 %150 }
 0x1fc   :  { %v219_v38 = vperm.slane %v151_v36, %v567_v34  ;;  %v167_v43 = vperm.slane %v151_v36, %v166_v41 }
 0x1fe   :  { %v221_v39 = vsel %vm161_vm1, %v220_v37, %v219_v38  ;;  %v169_v49 = vsel %vm161_vm1, %v168_v46, %v167_v43  ;;  %v323_v46 = vld [vmem:[#allocation7 + $0x88] sm:$0x1] }
 0x1ff   :  { %v223_v40 = vsel %vm176_vm2, %v221_v39, -inf  ;;  %381 = vmatpush.msk.msra.mxu2 %vm328_vm14, %v323_v46 }
 0x200   :  { %224 = vmax.xlane.f32.xlu2 %v223_v40 }
 0x203   :  { %v140_v44 = vpop.xlane.xlu2 %139 }
 0x204   :  { %v160_v47 = vperm.slane %v140_v44, %v567_v34 }
 0x206   :  { %v162_v48 = vsel %vm161_vm1, %v160_v47, %v159_v45  ;;  %v321_v47 = vld [vmem:[#allocation7 + $0x78] sm:$0xff] }
 0x207   :  { %v177_v50 = vsel %vm176_vm2, %v162_v48, -inf  ;;  %v172_v51 = vsel %vm171_vm3, %v162_v48, %v169_v49  ;;  %v320_v48 = vld [vmem:[#allocation7 + $0x70] sm:$0xff]  ;;  %v319_v49 = vld [vmem:[#allocation7 + $0x68] sm:$0xff] }
 0x208   :  { %178 = vmax.xlane.f32.xlu0 %v177_v50  ;;  %v174_v52 = vsel %vm173_vm4, %v172_v51, 0.0  ;;  %v318_v50 = vld [vmem:[#allocation7 + $0x60] sm:$0xff]  ;;  %v317_v51 = vld [vmem:[#allocation7 + $0x58] sm:$0xff] }
 0x209   :  { %175 = vst [vmem:[%s606_s3] sm:$0x3] %v174_v52  ;;  %v316_v52 = vld [vmem:[#allocation7 + $0x50] sm:$0xff]  ;;  %s515_s3 = smov 32  }
 0x273   :  { %v225_v54 = vpop.xlane.xlu2 %224 }
 0x274   :  { %v227_v55 = vperm.slane %v225_v54, 0  ;;  %v228_v56 = vperm.slane %v225_v54, 1  ;;  %v313_v54 = vld [vmem:[#allocation7 + $0x38] sm:$0xff] }
 0x276   :  { %vm232_vm5 = vcmp.ge.f32.partialorder %v154_v35, %v228_v56  ;;  %vm231_vm6 = vcmp.ge.f32.partialorder %v151_v36, %v227_v55  ;;  %v263_v35 = vsel %vm261_vm11, %v564_v33, %v378_v29  ;;  %v322_v33 = vld [vmem:[#allocation7 + $0x80] sm:$0xff] }
 0x277   :  { %v234_v58 = vsel %vm232_vm5, %v192_v57, 8  ;;  %v233_v59 = vsel %vm231_vm6, %v192_v57, 8  ;;  %v264_v39 = vmul.u32 8, %v263_v35  ;;  %336 = vmatpush.msra.mxu2 %v322_v33 }
 0x278   :  { %239 = vperm.xlu0 %396, %v234_v58   ;;  %236 = vperm.xlu2 %395, %v233_v59   ;;  %v311_v58 = vld [vmem:[#allocation7 + $0x28] sm:$0xff] }
 0x279   :  { %337 = vmatpush.msra.mxu2 %v321_v47 }
 0x27b   :  { %v179_v60 = vpop.xlane.xlu0 %178  ;;  %338 = vmatpush.msra.mxu2 %v320_v48 }
 0x27c   :  { %v181_v61 = vperm.slane %v179_v60, 0  ;;  %v182_v62 = vperm.slane %v179_v60, 1 }
 0x27d   :  { %339 = vmatpush.msra.mxu2 %v319_v49 }
 0x27e   :  { %vm185_vm7 = vcmp.ge.f32.partialorder %v137_v42, %v181_v61  ;;  %vm186_vm8 = vcmp.ge.f32.partialorder %v140_v44, %v182_v62  ;;  %v514_v44 = vmov 0.0  }
 0x27f   :  { %v193_v63 = vsel %vm185_vm7, %v192_v57, 8  ;;  %v194_v0 = vsel %vm186_vm8, %v192_v57, 8  ;;  %340 = vmatpush.msra.mxu2 %v318_v50  ;;  %v312_v57 = vld [vmem:[#allocation7 + $0x30] sm:$0xff] }
 0x280   :  { %196 = vperm.xlu1 %397, %v193_v63   ;;  %199 = vperm.xlu2 %395, %v194_v0  }
 0x281   :  { %341 = vmatpush.msra.mxu2 %v317_v51 }
 0x283   :  { %342 = vmatpush.msra.mxu2 %v316_v52 }
 0x2d2   :  { %v237_v1 = vpop.permute.xlu2 %236 }
 0x2d3   :  { %v241_v3 = vperm.slane %v237_v1, %v567_v34 }
 0x2da   :  { %v200_v9 = vpop.permute.xlu2 %199 }
 0x2db   :  { %v202_v12 = vperm.slane %v200_v9, %v567_v34 }
 0x2ea   :  { %v240_v2 = vpop.permute.xlu0 %239 }
 0x2eb   :  { %v242_v4 = vperm.slane %v240_v2, %v567_v34 }
 0x2ed   :  { %v243_v5 = vsel %vm161_vm1, %v242_v4, %v241_v3 }
 0x2ee   :  { %v244_v6 = vsel %vm176_vm2, %v243_v5, 2147483647 }
 0x2ef   :  { %v246_v8 = vshra.s32 %v244_v6, 16  ;;  %v245_v18 = vand.u32 65535, %v244_v6 }
 0x2f1   :  { %v248_v10 = vcvt.s32.f32 %v246_v8  ;;  %v247_v20 = vcvt.s32.f32 %v245_v18 }
 0x2f2   :  { %v197_v11 = vpop.permute.xlu1 %196 }
 0x2f3   :  { %v201_v13 = vperm.slane %v197_v11, %v567_v34  ;;  %249 = vmin.xlane.f32.xlu1 %v248_v10 }
 0x2f5   :  { %v203_v14 = vsel %vm161_vm1, %v202_v12, %v201_v13  ;;  %vm309_vm1 = vcmask 785408  }
 0x2f6   :  { %v204_v15 = vsel %vm176_vm2, %v203_v14, 2147483647  ;;  %vm324_vm2 = vcmask 793600  }
 0x2f7   :  { %v206_v16 = vshra.s32 %v204_v15, 16  ;;  %v205_v22 = vand.u32 65535, %v204_v15 }
 0x2f9   :  { %v208_v17 = vcvt.s32.f32 %v206_v16  ;;  %v207_v24 = vcvt.s32.f32 %v205_v22 }
 0x2fb   :  { %209 = vmin.xlane.f32.xlu2 %v208_v17 }
 0x366   :  { %v250_v19 = vpop.xlane.xlu1 %249 }
 0x367   :  { %vm251_vm9 = vcmp.eq.f32.partialorder %v248_v10, %v250_v19  ;;  %v256_v27 = vcvt.f32.s32 %v250_v19 }
 0x368   :  { %v252_v21 = vsel %vm251_vm9, %v247_v20, inf }
 0x369   :  { %253 = vmin.xlane.f32.xlu0 %v252_v21  ;;  %v257_v30 = vshll.u32 %v256_v27, 16 }
 0x36e   :  { %v210_v23 = vpop.xlane.xlu2 %209 }
 0x36f   :  { %vm211_vm10 = vcmp.eq.f32.partialorder %v208_v17, %v210_v23  ;;  %v216_v31 = vcvt.f32.s32 %v210_v23 }
 0x370   :  { %v212_v25 = vsel %vm211_vm10, %v207_v24, inf }
 0x371   :  { %213 = vmin.xlane.f32.xlu1 %v212_v25  ;;  %v217_v37 = vshll.u32 %v216_v31, 16 }
 0x37d   :  { %303 = vrot.lane.b32.xlu0 %v554_v7, %s511_s0 }
 0x3dc   :  { %v254_v26 = vpop.xlane.xlu0 %253 }
 0x3dd   :  { %v255_v28 = vcvt.f32.s32 %v254_v26 }
 0x3df   :  { %v258_v32 = vadd.s32 %v257_v30, %v255_v28 }
 0x3e1   :  { %v265_v40 = vrot.slane %v258_v32, 6 }
 0x3e4   :  { %v214_v36 = vpop.xlane.xlu1 %213 }
 0x3e5   :  { %v215_v38 = vcvt.f32.s32 %v214_v36 }
 0x3e7   :  { %v218_v41 = vadd.s32 %v217_v37, %v215_v38 }
 0x3e9   :  { %v267_v7 = vsel %vm266_vm12, %v218_v41, %v265_v40 }
 0x3ea   :  { %v268_v42 = vadd.s32 %v267_v7, %v264_v39 }
 0x3ec   :  { %270 = vperm.xlu2 %395, %v268_v42  }
 0x3ef   :  { %v304_v59 = vpop.permute.xlu0 %303 }
 0x446   :  { %v271_v43 = vpop.permute.xlu2 %270 }
 0x447   :  { %vm272_vm13 = vcmp.eq.s32.totalorder %v567_v34, %v271_v43  ;;  %v315_v34 = vld [vmem:[#allocation7 + $0x48] sm:$0xff] }
 0x448   :  { %v379_v45 = vsel %vm272_vm13, 1.0, %v514_v44  ;;  %343 = vmatpush.msra.mxu2 %v315_v34 }
 0x449   :  { %380 = vmatmul.msk.f32.vlgmr.msra.gmra.mxu1 %vm173_vm4, %v379_v45 }
 0x44a   :  { %344 = vmatpush.msra.mxu2 %v314_v53 }
 0x44c   :  { %345 = vmatpush.msra.mxu2 %v313_v54 }
 0x44e   :  { %346 = vmatpush.msra.mxu2 %v312_v57 }
 0x450   :  { %347 = vmatpush.msra.mxu2 %v311_v58 }
 0x4c6   :  { %v295_v55 = vpop.f32.mrf.mxu1 }
 0x4c7   :  { %v299_v56 = vrot.slane %v295_v55, 2 }
 0x4c9   :  { %300 = vrot.lane.b32.xlu1 %v299_v56, %s515_s3 }
 0x53b   :  { %v301_v60 = vpop.permute.xlu1 %300 }
 0x53c   :  { %v306_v61 = vsel %vm71_vm0, %v295_v55, %v301_v60 }
 0x53d   :  { %v308_v62 = vsel %vm307_vm15, %v306_v61, %v304_v59 }
 0x53e   :  { %v310_v63 = vsel %vm309_vm1, %v308_v62, 1.0 }
 0x53f   :  { %382 = vmatmul.msk.f32.vlgmr.msra.gmra.mxu2 %vm324_vm2, %v310_v63 }
 0x5c2   :  { %v349_v0 = vpop.f32.mrf.mxu2 }
 0x5c3   :  { %352 = vst [vmem:[#allocation8] sm:$0x3] %v349_v0 }
 0x5c4   :  { %365 = dma.vmem_to_hbm [thread:$0]  %s361_s8, 32, %s363_s11, [#allocation4]  }
 0x5c5   :  { %504 = dma.done.wait [#allocation4], 32  }
 0x5c6   :  { %505 = vsyncadd [#allocation4], 4294967264 }
 0x5c7   :  { %372 = vsyncpa [#allocation3], 1 }
 0x5c8   :  { %373 = vsyncpa [#allocation6], 1 }
 0x5c9   :  { %374 = vsyncpa [#allocation4], 1 }

</bundles_post_ra>
